<compile_context>
chip_gen: v6e
topology: v6e:2x2x1
jax: 0.10.0
libtpu: 0.0.40
codegen_flags: <defaults>
</compile_context>

<pallas_src>
import functools

import jax
import jax.numpy as jnp
from jax.experimental import pallas as pl
from jax.experimental.pallas import tpu as pltpu


def _mlp_relu_kernel(p_ref, x_ref, o_ref, *, layer_dims, compute_dtype):
    """Tiny width-2 MLP, VPU-only, batch as a dense 2-D tile.

    p_ref : SMEM f32[total_params], packed [W0 row-major [in,out], b0, W1, b1, ...]
    x_ref : VMEM [block_rows, lanes]          (one scalar feature per element)
    o_ref : VMEM [out_dim, block_rows, lanes]
    """
    n_layers = len(layer_dims)
    # Hidden state = list of (block_rows, lanes) planes, one per neuron of the
    # current layer, kept as pure values (live in vregs, never spilled to VMEM).
    h = [x_ref[...].astype(compute_dtype)]
    off = 0
    for li, (d_in, d_out) in enumerate(layer_dims):
        w_off = off
        b_off = off + d_in * d_out
        new_h = []
        for j in range(d_out):
            # val = sum_k W[k, j] * h[k] + b[j]   (scalar-broadcast VPU math)
            val = p_ref[w_off + j].astype(compute_dtype) * h[0]
            for k in range(1, d_in):
                val = val + p_ref[w_off + k * d_out + j].astype(compute_dtype) * h[k]
            val = val + p_ref[b_off + j].astype(compute_dtype)
            if li < n_layers - 1:                 # ReLU on every layer but the last
                val = jnp.maximum(val, 0.0)
            new_h.append(val)
        h = new_h
        off = b_off + d_out
    for j in range(len(h)):                       # out_dim rows (1 for this module)
        o_ref[j] = h[j].astype(o_ref.dtype)


def _pick_compute_dtype():
    """bf16 VPU exists on v6e/v7x; keep f32 on v5e and older (per review)."""
    try:
        kind = jax.devices()[0].device_kind.lower()
    except Exception:
        return jnp.float32
    if any(tag in kind for tag in ("v2", "v3", "v4", "v5")):
        return jnp.float32
    return jnp.bfloat16


def relu_layers_forward(x, params, *, lanes=512, max_block_rows=512,
                        compute_dtype=None):
    """Forward pass of ReLULayers.

    x       : [N, 1] (or [N]) float32
    params  : list of (W [d_in, d_out], b [*, d_out]) for each nn.Linear
    returns : [N, out_dim] float32
    """
    if compute_dtype is None:
        compute_dtype = _pick_compute_dtype()

    assert lanes % 128 == 0, "lanes must be a multiple of 128 (lane tiling rule)"
    assert max_block_rows % 8 == 0, "block rows must be a multiple of 8"

    x = x.reshape(-1)                              # [N]; the MLP is per-element
    N = x.shape[0]
    layer_dims = tuple((int(w.shape[0]), int(w.shape[1])) for w, _ in params)
    assert layer_dims[0][0] == 1, "first Linear must have in_features == 1"
    out_dim = layer_dims[-1][1]

    # Pack every weight (row-major [in,out]) and bias into one flat f32 vector:
    # a single tiny SMEM operand instead of 13 padded (8,128) VMEM tiles.
    flat_params = jnp.concatenate(
        [jnp.concatenate([w.reshape(-1), b.reshape(-1)]) for w, b in params]
    ).astype(jnp.float32)

    # Dense 2-D layout via contiguous reshape (no transpose).
    rows = pl.cdiv(N, lanes)
    block_rows = min(max_block_rows, ((rows + 7) // 8) * 8)
    rows_pad = pl.cdiv(rows, block_rows) * block_rows
    total_pad = rows_pad * lanes
    if total_pad != N:
        # TODO(synk): ragged tail handled by pad+slice; a masked store in the
        # last block would avoid this extra HBM pass for non-divisible N.
        x = jnp.pad(x, (0, total_pad - N))
    x2d = x.reshape(rows_pad, lanes)

    grid = (rows_pad // block_rows,)
    kernel = functools.partial(_mlp_relu_kernel, layer_dims=layer_dims,
                               compute_dtype=compute_dtype)

    out = pl.pallas_call(
        kernel,
        out_shape=jax.ShapeDtypeStruct((out_dim, rows_pad, lanes), x.dtype),
        grid=grid,
        in_specs=[
            pl.BlockSpec(memory_space=pltpu.MemorySpace.SMEM),     # packed params
            pl.BlockSpec((block_rows, lanes), lambda i: (i, 0)),   # dense x tile
        ],
        out_specs=pl.BlockSpec((out_dim, block_rows, lanes), lambda i: (0, i, 0)),
        compiler_params=pltpu.CompilerParams(
            dimension_semantics=("parallel",)),    # megacore / v7x TC sharding
    )(flat_params, x2d)

    out = out.reshape(out_dim, total_pad)
    if total_pad != N:
        out = out[:, :N]
    return out.T                                   # [N, out_dim]


def init_params(key, width=2, n_layers=6):
    """Kaiming-normal (fan_in, relu) weights, zero biases — matches init_weights()."""
    dims = [1] + [width] * (n_layers - 1) + [1]
    keys = jax.random.split(key, n_layers)
    params = []
    for i in range(n_layers):
        fan_in = dims[i]
        std = (2.0 / fan_in) ** 0.5                # kaiming_normal_, mode='fan_in'
        w = jax.random.normal(keys[i], (dims[i], dims[i + 1]), jnp.float32) * std
        b = jnp.zeros((1, dims[i + 1]), jnp.float32)
        params.append((w, b))
    return params


def reference_forward(x, params):
    h = x
    for i, (w, b) in enumerate(params):
        h = jnp.dot(h, w, precision=jax.lax.Precision.HIGHEST) + b
        if i < len(params) - 1:
            h = jnp.maximum(h, 0.0)
    return h


if __name__ == "__main__":
    key = jax.random.PRNGKey(0)
    k_x, k_p = jax.random.split(key)

    batch = 4096                      # 8 sublanes x 512 lanes -> one dense tile, no pad
    x = jax.random.normal(k_x, (batch, 1), jnp.float32)
    params = init_params(k_p, width=2, n_layers=6)

    ref = reference_forward(x, params)

    # 1) f32 compute path — exact check.
    out = relu_layers_forward(x, params, compute_dtype=jnp.float32)
    out = jax.block_until_ready(out)
    assert out.shape == (batch, 1)
    assert jnp.allclose(out, ref, atol=1e-5, rtol=1e-5)

    # 2) Multi-block grid (exercises the pipelined "parallel" grid path).
    out2 = relu_layers_forward(x, params, lanes=128, max_block_rows=16,
                               compute_dtype=jnp.float32)
    out2 = jax.block_until_ready(out2)
    assert jnp.allclose(out2, ref, atol=1e-5, rtol=1e-5)

    # 3) Hardware-default compute dtype (bf16 on v6e/v7x, f32 on v5e/older).
    out3 = relu_layers_forward(x, params)
    out3 = jax.block_until_ready(out3)
    assert out3.shape == (batch, 1)
    assert float(jnp.mean(jnp.abs(out3 - ref))) < 0.05   # loose: bf16 rounding

    print("KERNEL_OK")
</pallas_src>

<mosaic_0001>
module attributes {stable_mosaic.version = 11 : i64} {
  func.func @_mlp_relu_kernel(%arg0: i32, %arg1: memref<31xf32, #tpu.memory_space<smem>>, %arg2: memref<8x512xf32, #tpu.memory_space<vmem>>, %arg3: memref<1x8x512xf32, #tpu.memory_space<vmem>>) attributes {dimension_semantics = [#tpu.dimension_semantics<parallel>], iteration_bounds = array<i64: 1>, scalar_prefetch = 0 : i64, scratch_operands = 0 : i64, tpu.core_type = #tpu.core_type<tc>, window_params = [{transform_indices = @transform_0, window_bounds = array<i64: 31>}, {transform_indices = @transform_1, window_bounds = array<i64: 8, 512>}, {transform_indices = @transform_2, window_bounds = array<i64: 1, 8, 512>}]} {
    %c0 = arith.constant 0 : index
    %c0_0 = arith.constant 0 : index
    %0 = vector.load %arg2[%c0, %c0_0] : memref<8x512xf32, #tpu.memory_space<vmem>>, vector<8x512xf32>
    %c0_1 = arith.constant 0 : index
    %1 = memref.load %arg1[%c0_1] : memref<31xf32, #tpu.memory_space<smem>>
    %2 = vector.broadcast %1 : f32 to vector<8x512xf32>
    %3 = arith.mulf %2, %0 : vector<8x512xf32>
    %c2 = arith.constant 2 : index
    %4 = memref.load %arg1[%c2] : memref<31xf32, #tpu.memory_space<smem>>
    %5 = vector.broadcast %4 : f32 to vector<8x512xf32>
    %6 = arith.addf %3, %5 : vector<8x512xf32>
    %cst = arith.constant 0.000000e+00 : f32
    %7 = vector.broadcast %cst : f32 to vector<8x512xf32>
    %8 = arith.maximumf %6, %7 : vector<8x512xf32>
    %c1 = arith.constant 1 : index
    %9 = memref.load %arg1[%c1] : memref<31xf32, #tpu.memory_space<smem>>
    %10 = vector.broadcast %9 : f32 to vector<8x512xf32>
    %11 = arith.mulf %10, %0 : vector<8x512xf32>
    %c3 = arith.constant 3 : index
    %12 = memref.load %arg1[%c3] : memref<31xf32, #tpu.memory_space<smem>>
    %13 = vector.broadcast %12 : f32 to vector<8x512xf32>
    %14 = arith.addf %11, %13 : vector<8x512xf32>
    %cst_2 = arith.constant 0.000000e+00 : f32
    %15 = vector.broadcast %cst_2 : f32 to vector<8x512xf32>
    %16 = arith.maximumf %14, %15 : vector<8x512xf32>
    %c4 = arith.constant 4 : index
    %17 = memref.load %arg1[%c4] : memref<31xf32, #tpu.memory_space<smem>>
    %18 = vector.broadcast %17 : f32 to vector<8x512xf32>
    %19 = arith.mulf %18, %8 : vector<8x512xf32>
    %c6 = arith.constant 6 : index
    %20 = memref.load %arg1[%c6] : memref<31xf32, #tpu.memory_space<smem>>
    %21 = vector.broadcast %20 : f32 to vector<8x512xf32>
    %22 = arith.mulf %21, %16 : vector<8x512xf32>
    %23 = arith.addf %19, %22 : vector<8x512xf32>
    %c8 = arith.constant 8 : index
    %24 = memref.load %arg1[%c8] : memref<31xf32, #tpu.memory_space<smem>>
    %25 = vector.broadcast %24 : f32 to vector<8x512xf32>
    %26 = arith.addf %23, %25 : vector<8x512xf32>
    %cst_3 = arith.constant 0.000000e+00 : f32
    %27 = vector.broadcast %cst_3 : f32 to vector<8x512xf32>
    %28 = arith.maximumf %26, %27 : vector<8x512xf32>
    %c5 = arith.constant 5 : index
    %29 = memref.load %arg1[%c5] : memref<31xf32, #tpu.memory_space<smem>>
    %30 = vector.broadcast %29 : f32 to vector<8x512xf32>
    %31 = arith.mulf %30, %8 : vector<8x512xf32>
    %c7 = arith.constant 7 : index
    %32 = memref.load %arg1[%c7] : memref<31xf32, #tpu.memory_space<smem>>
    %33 = vector.broadcast %32 : f32 to vector<8x512xf32>
    %34 = arith.mulf %33, %16 : vector<8x512xf32>
    %35 = arith.addf %31, %34 : vector<8x512xf32>
    %c9 = arith.constant 9 : index
    %36 = memref.load %arg1[%c9] : memref<31xf32, #tpu.memory_space<smem>>
    %37 = vector.broadcast %36 : f32 to vector<8x512xf32>
    %38 = arith.addf %35, %37 : vector<8x512xf32>
    %cst_4 = arith.constant 0.000000e+00 : f32
    %39 = vector.broadcast %cst_4 : f32 to vector<8x512xf32>
    %40 = arith.maximumf %38, %39 : vector<8x512xf32>
    %c10 = arith.constant 10 : index
    %41 = memref.load %arg1[%c10] : memref<31xf32, #tpu.memory_space<smem>>
    %42 = vector.broadcast %41 : f32 to vector<8x512xf32>
    %43 = arith.mulf %42, %28 : vector<8x512xf32>
    %c12 = arith.constant 12 : index
    %44 = memref.load %arg1[%c12] : memref<31xf32, #tpu.memory_space<smem>>
    %45 = vector.broadcast %44 : f32 to vector<8x512xf32>
    %46 = arith.mulf %45, %40 : vector<8x512xf32>
    %47 = arith.addf %43, %46 : vector<8x512xf32>
    %c14 = arith.constant 14 : index
    %48 = memref.load %arg1[%c14] : memref<31xf32, #tpu.memory_space<smem>>
    %49 = vector.broadcast %48 : f32 to vector<8x512xf32>
    %50 = arith.addf %47, %49 : vector<8x512xf32>
    %cst_5 = arith.constant 0.000000e+00 : f32
    %51 = vector.broadcast %cst_5 : f32 to vector<8x512xf32>
    %52 = arith.maximumf %50, %51 : vector<8x512xf32>
    %c11 = arith.constant 11 : index
    %53 = memref.load %arg1[%c11] : memref<31xf32, #tpu.memory_space<smem>>
    %54 = vector.broadcast %53 : f32 to vector<8x512xf32>
    %55 = arith.mulf %54, %28 : vector<8x512xf32>
    %c13 = arith.constant 13 : index
    %56 = memref.load %arg1[%c13] : memref<31xf32, #tpu.memory_space<smem>>
    %57 = vector.broadcast %56 : f32 to vector<8x512xf32>
    %58 = arith.mulf %57, %40 : vector<8x512xf32>
    %59 = arith.addf %55, %58 : vector<8x512xf32>
    %c15 = arith.constant 15 : index
    %60 = memref.load %arg1[%c15] : memref<31xf32, #tpu.memory_space<smem>>
    %61 = vector.broadcast %60 : f32 to vector<8x512xf32>
    %62 = arith.addf %59, %61 : vector<8x512xf32>
    %cst_6 = arith.constant 0.000000e+00 : f32
    %63 = vector.broadcast %cst_6 : f32 to vector<8x512xf32>
    %64 = arith.maximumf %62, %63 : vector<8x512xf32>
    %c16 = arith.constant 16 : index
    %65 = memref.load %arg1[%c16] : memref<31xf32, #tpu.memory_space<smem>>
    %66 = vector.broadcast %65 : f32 to vector<8x512xf32>
    %67 = arith.mulf %66, %52 : vector<8x512xf32>
    %c18 = arith.constant 18 : index
    %68 = memref.load %arg1[%c18] : memref<31xf32, #tpu.memory_space<smem>>
    %69 = vector.broadcast %68 : f32 to vector<8x512xf32>
    %70 = arith.mulf %69, %64 : vector<8x512xf32>
    %71 = arith.addf %67, %70 : vector<8x512xf32>
    %c20 = arith.constant 20 : index
    %72 = memref.load %arg1[%c20] : memref<31xf32, #tpu.memory_space<smem>>
    %73 = vector.broadcast %72 : f32 to vector<8x512xf32>
    %74 = arith.addf %71, %73 : vector<8x512xf32>
    %cst_7 = arith.constant 0.000000e+00 : f32
    %75 = vector.broadcast %cst_7 : f32 to vector<8x512xf32>
    %76 = arith.maximumf %74, %75 : vector<8x512xf32>
    %c17 = arith.constant 17 : index
    %77 = memref.load %arg1[%c17] : memref<31xf32, #tpu.memory_space<smem>>
    %78 = vector.broadcast %77 : f32 to vector<8x512xf32>
    %79 = arith.mulf %78, %52 : vector<8x512xf32>
    %c19 = arith.constant 19 : index
    %80 = memref.load %arg1[%c19] : memref<31xf32, #tpu.memory_space<smem>>
    %81 = vector.broadcast %80 : f32 to vector<8x512xf32>
    %82 = arith.mulf %81, %64 : vector<8x512xf32>
    %83 = arith.addf %79, %82 : vector<8x512xf32>
    %c21 = arith.constant 21 : index
    %84 = memref.load %arg1[%c21] : memref<31xf32, #tpu.memory_space<smem>>
    %85 = vector.broadcast %84 : f32 to vector<8x512xf32>
    %86 = arith.addf %83, %85 : vector<8x512xf32>
    %cst_8 = arith.constant 0.000000e+00 : f32
    %87 = vector.broadcast %cst_8 : f32 to vector<8x512xf32>
    %88 = arith.maximumf %86, %87 : vector<8x512xf32>
    %c22 = arith.constant 22 : index
    %89 = memref.load %arg1[%c22] : memref<31xf32, #tpu.memory_space<smem>>
    %90 = vector.broadcast %89 : f32 to vector<8x512xf32>
    %91 = arith.mulf %90, %76 : vector<8x512xf32>
    %c24 = arith.constant 24 : index
    %92 = memref.load %arg1[%c24] : memref<31xf32, #tpu.memory_space<smem>>
    %93 = vector.broadcast %92 : f32 to vector<8x512xf32>
    %94 = arith.mulf %93, %88 : vector<8x512xf32>
    %95 = arith.addf %91, %94 : vector<8x512xf32>
    %c26 = arith.constant 26 : index
    %96 = memref.load %arg1[%c26] : memref<31xf32, #tpu.memory_space<smem>>
    %97 = vector.broadcast %96 : f32 to vector<8x512xf32>
    %98 = arith.addf %95, %97 : vector<8x512xf32>
    %cst_9 = arith.constant 0.000000e+00 : f32
    %99 = vector.broadcast %cst_9 : f32 to vector<8x512xf32>
    %100 = arith.maximumf %98, %99 : vector<8x512xf32>
    %c23 = arith.constant 23 : index
    %101 = memref.load %arg1[%c23] : memref<31xf32, #tpu.memory_space<smem>>
    %102 = vector.broadcast %101 : f32 to vector<8x512xf32>
    %103 = arith.mulf %102, %76 : vector<8x512xf32>
    %c25 = arith.constant 25 : index
    %104 = memref.load %arg1[%c25] : memref<31xf32, #tpu.memory_space<smem>>
    %105 = vector.broadcast %104 : f32 to vector<8x512xf32>
    %106 = arith.mulf %105, %88 : vector<8x512xf32>
    %107 = arith.addf %103, %106 : vector<8x512xf32>
    %c27 = arith.constant 27 : index
    %108 = memref.load %arg1[%c27] : memref<31xf32, #tpu.memory_space<smem>>
    %109 = vector.broadcast %108 : f32 to vector<8x512xf32>
    %110 = arith.addf %107, %109 : vector<8x512xf32>
    %cst_10 = arith.constant 0.000000e+00 : f32
    %111 = vector.broadcast %cst_10 : f32 to vector<8x512xf32>
    %112 = arith.maximumf %110, %111 : vector<8x512xf32>
    %c28 = arith.constant 28 : index
    %113 = memref.load %arg1[%c28] : memref<31xf32, #tpu.memory_space<smem>>
    %114 = vector.broadcast %113 : f32 to vector<8x512xf32>
    %115 = arith.mulf %114, %100 : vector<8x512xf32>
    %c29 = arith.constant 29 : index
    %116 = memref.load %arg1[%c29] : memref<31xf32, #tpu.memory_space<smem>>
    %117 = vector.broadcast %116 : f32 to vector<8x512xf32>
    %118 = arith.mulf %117, %112 : vector<8x512xf32>
    %119 = arith.addf %115, %118 : vector<8x512xf32>
    %c30 = arith.constant 30 : index
    %120 = memref.load %arg1[%c30] : memref<31xf32, #tpu.memory_space<smem>>
    %121 = vector.broadcast %120 : f32 to vector<8x512xf32>
    %122 = arith.addf %119, %121 : vector<8x512xf32>
    %c0_11 = arith.constant 0 : index
    %c0_12 = arith.constant 0 : index
    %c0_13 = arith.constant 0 : index
    %123 = vector.load %arg3[%c0_11, %c0_12, %c0_13] : memref<1x8x512xf32, #tpu.memory_space<vmem>>, vector<1x8x512xf32>
    %124 = vector.shape_cast %123 : vector<1x8x512xf32> to vector<8x512xf32>
    %125 = vector.shape_cast %122 : vector<8x512xf32> to vector<1x8x512xf32>
    tpu.vector_store %arg3[%c0_11, %c0_12, %c0_13], %125 {strides = array<i32>} : memref<1x8x512xf32, #tpu.memory_space<vmem>>, vector<1x8x512xf32>,
    return
  }
  func.func @transform_0(%arg0: i32) -> i32 {
    %c0_i32 = arith.constant 0 : i32
    %c0_i32_0 = arith.constant 0 : i32
    return %c0_i32 : i32
  }
  func.func @transform_1(%arg0: i32) -> (i32, i32) {
    %c0_i32 = arith.constant 0 : i32
    %c0_i32_0 = arith.constant 0 : i32
    return %arg0, %c0_i32 : i32, i32
  }
  func.func @transform_2(%arg0: i32) -> (i32, i32, i32) {
    %c0_i32 = arith.constant 0 : i32
    %c0_i32_0 = arith.constant 0 : i32
    %c0_i32_1 = arith.constant 0 : i32
    return %c0_i32, %arg0, %c0_i32_0 : i32, i32, i32
  }
}

</mosaic_0001>

<bundles_post_ra>
// kernel: tpu_custom_call.1
= control target key start
LH: loop header
LB: loop body
LE: loop exit
PB: predicated region body
PF: predicated region fallthrough
CT: control target
= control target key end

     0   :  { %7 = vsyncpa [#allocation5], 0  ;;  %s631_s0 = inlined_call_operand.hbm [shape: f32[31], index: 0, kind: input, shape index: {}]   ;;  %s632_s1 = inlined_call_operand.hbm [shape: f32[8,512], index: 1, kind: input, shape index: {}]   ;;  %s633_s2 = inlined_call_operand.hbm [shape: f32[1,8,512], index: 2, kind: output, shape index: {}]  }
   0x1   :  { %8 = vsyncpa [#allocation3], 0 }
   0x2   :  { %9 = vsyncpa [#allocation4], 0  ;;  %s408_s9 = smov [#allocation2]   ;;  %s409_s12 = smov [#allocation6]  }
   0x3   :  { %17 = dma.hbm_to_smem %s631_s0, 16, %s408_s9, [#allocation5]  }
   0x4   :  { %s24_s13 = sshll.u32 %s409_s12, 4  ;;  %s25_s13 = int_to_ptr.vmem [resolvable:$true] %s24_s13 }
   0x5   :  { %s370_s14 = scalar_lea.vmem %s25_s13, 512  ;;  %p375_p1 = scmp.lt.s32.totalorder %s25_s13, %s25_s13 }
   0x6   :  { %p371_p0 = scmp.ne.s32.totalorder %s25_s13, %s370_s14  ;;  %p376_p2 = scmp.lt.s32.totalorder %s370_s14, %s370_s14 }
   0x8   :  { %p377_p3 = por %p376_p2, %p375_p1 }
   0xa   :  { %p378_p4 = pnand %p377_p3, %p371_p0 }
   0xc   :  { %381 = shalt.err (!%p378_p4)
}
   0xd   :  { %27 = dma.hbm_to_vmem [thread:$0]  %s632_s1, 512, %s25_s13, [#allocation3]  }
   0xe   :  { %402 = dma.done.wait [#allocation5], 16  }
   0xf   :  { %403 = vsyncadd [#allocation5], 4294967280 }
  0x10   :  { %404 = dma.done.wait [#allocation3], 512  }
  0x11   :  { %405 = vsyncadd [#allocation3], 4294966784 }
  0x12   :  { %34 = sfence }
  0x13   :  { %s39_s0 = sld [smem:[#allocation2]]  ;;  %v35_v0 = vld [vmem:[#allocation6] sm:$0xff]  ;;  %v36_v1 = vld [vmem:[#allocation6 + $0x8] sm:$0xff]  ;;  %v37_v2 = vld [vmem:[#allocation6 + $0x10] sm:$0xff] }
  0x14   :  { %s321_s17 = sld [smem:[#allocation2 + $0x2]]  ;;  %v432_v3 = vld [vmem:[#allocation6 + $0x18] sm:$0xff] }
  0x15   :  { %s322_s18 = sld [smem:[#allocation2 + $0x1]] }
  0x16   :  { %s323_s19 = sld [smem:[#allocation2 + $0x3]] }
  0x17   :  { %s324_s20 = sld [smem:[#allocation2 + $0x4]] }
  0x18   :  { %s325_s21 = sld [smem:[#allocation2 + $0x6]] }
  0x19   :  { %v40_v4 = vstv %s39_s0  ;;  %s326_s22 = sld [smem:[#allocation2 + $0x8]] }
  0x1a   :  { %v41_v5 = vmul.f32 %v40_v4, %v35_v0  ;;  %v434_v6 = vstv %s321_s17  ;;  %s327_s1 = sld [smem:[#allocation2 + $0x5]]  ;;  %v42_v7 = vmul.f32 %v40_v4, %v36_v1  ;;  %v43_v8 = vmul.f32 %v40_v4, %v37_v2  ;;  %s410_s17 = smov [#allocation7]  }
  0x1b   :  { %v436_v9 = vstv %s322_s18  ;;  %s328_s23 = sld [smem:[#allocation2 + $0x7]]  ;;  %v439_v10 = vmul.f32 %v40_v4, %v432_v3  ;;  %s311_s18 = sshll.u32 %s410_s17, 4  ;;  %s312_s18 = int_to_ptr.vmem [resolvable:$true] %s311_s18 }
  0x1c   :  { %v47_v11 = vadd.f32 %v434_v6, %v41_v5  ;;  %v57_v12 = vmul.f32 %v436_v9, %v35_v0  ;;  %v443_v13 = vstv %s323_s19  ;;  %s329_s24 = sld [smem:[#allocation2 + $0x9]]  ;;  %v48_v14 = vadd.f32 %v434_v6, %v42_v7  ;;  %s382_s19 = scalar_lea.vmem %s312_s18, 512 }
  0x1d   :  { %v446_v15 = vstv %s324_s20  ;;  %s330_s25 = sld [smem:[#allocation2 + $0xa]]  ;;  %v58_v16 = vmul.f32 %v436_v9, %v36_v1  ;;  %v49_v17 = vadd.f32 %v434_v6, %v43_v8  ;;  %v59_v18 = vmul.f32 %v436_v9, %v37_v2  ;;  %p383_p5 = scmp.ne.s32.totalorder %s312_s18, %s382_s19 }
  0x1e   :  { %v51_v19 = vmax.f32 %v47_v11, 0.0  ;;  %v63_v20 = vadd.f32 %v443_v13, %v57_v12  ;;  %v452_v21 = vstv %s325_s21  ;;  %s331_s26 = sld [smem:[#allocation2 + $0xc]]  ;;  %v52_v22 = vmax.f32 %v48_v14, 0.0  ;;  %p387_p6 = scmp.lt.s32.totalorder %s312_s18, %s312_s18 }
  0x1f   :  { %v454_v23 = vstv %s326_s22  ;;  %s332_s27 = sld [smem:[#allocation2 + $0xe]]  ;;  %v64_v24 = vadd.f32 %v443_v13, %v58_v16  ;;  %v53_v25 = vmax.f32 %v49_v17, 0.0  ;;  %v65_v26 = vadd.f32 %v443_v13, %v59_v18  ;;  %p388_p7 = scmp.lt.s32.totalorder %s382_s19, %s382_s19 }
  0x20   :  { %v67_v27 = vmax.f32 %v63_v20, 0.0  ;;  %v73_v28 = vmul.f32 %v446_v15, %v51_v19  ;;  %v459_v29 = vstv %s327_s1  ;;  %s333_s28 = sld [smem:[#allocation2 + $0xb]]  ;;  %v74_v30 = vmul.f32 %v446_v15, %v52_v22 }
  0x21   :  { %v99_v31 = vmul.f32 %v459_v29, %v51_v19  ;;  %v463_v32 = vstv %s328_s23  ;;  %s334_s29 = sld [smem:[#allocation2 + $0xd]]  ;;  %v68_v33 = vmax.f32 %v64_v24, 0.0  ;;  %v100_v34 = vmul.f32 %v459_v29, %v52_v22  ;;  %p389_p8 = por %p388_p7, %p387_p6 }
  0x22   :  { %v79_v35 = vmul.f32 %v452_v21, %v67_v27  ;;  %v105_v36 = vmul.f32 %v463_v32, %v67_v27  ;;  %v468_v37 = vstv %s329_s24  ;;  %s335_s30 = sld [smem:[#allocation2 + $0xf]]  ;;  %v69_v38 = vmax.f32 %v65_v26, 0.0 }
  0x23   :  { %v470_v39 = vstv %s330_s25  ;;  %s336_s3 = sld [smem:[#allocation2 + $0x10]]  ;;  %v80_v40 = vmul.f32 %v452_v21, %v68_v33  ;;  %v106_v41 = vmul.f32 %v463_v32, %v68_v33  ;;  %v75_v42 = vmul.f32 %v446_v15, %v53_v25  ;;  %p390_p9 = pnand %p389_p8, %p383_p5 }
  0x24   :  { %v83_v43 = vadd.f32 %v79_v35, %v73_v28  ;;  %v109_v44 = vadd.f32 %v105_v36, %v99_v31  ;;  %v475_v45 = vstv %s331_s26  ;;  %s477_s4 = sld [smem:[#allocation2 + $0x12]]  ;;  %v81_v46 = vmul.f32 %v452_v21, %v69_v38 }
  0x25   :  { %v480_v47 = vstv %s332_s27  ;;  %s482_s5 = sld [smem:[#allocation2 + $0x14]]  ;;  %v84_v48 = vadd.f32 %v80_v40, %v74_v30  ;;  %v110_v49 = vadd.f32 %v106_v41, %v100_v34  ;;  %v101_v50 = vmul.f32 %v459_v29, %v53_v25 }
  0x26   :  { %v89_v51 = vadd.f32 %v454_v23, %v83_v43  ;;  %v115_v52 = vadd.f32 %v468_v37, %v109_v44  ;;  %v487_v53 = vstv %s333_s28  ;;  %s339_s6 = sld [smem:[#allocation2 + $0x11]]  ;;  %v85_v54 = vadd.f32 %v81_v46, %v75_v42 }
  0x27   :  { %v489_v55 = vstv %s334_s29  ;;  %s340_s7 = sld [smem:[#allocation2 + $0x13]]  ;;  %v90_v56 = vadd.f32 %v454_v23, %v84_v48  ;;  %v116_v57 = vadd.f32 %v468_v37, %v110_v49  ;;  %v107_v58 = vmul.f32 %v463_v32, %v69_v38 }
  0x28   :  { %v93_v59 = vmax.f32 %v89_v51, 0.0  ;;  %v119_v60 = vmax.f32 %v115_v52, 0.0  ;;  %v494_v61 = vstv %s335_s30  ;;  %s341_s8 = sld [smem:[#allocation2 + $0x15]]  ;;  %v91_v62 = vadd.f32 %v454_v23, %v85_v54 }
  0x29   :  { %v497_v63 = vstv %s336_s3  ;;  %s342_s9 = sld [smem:[#allocation2 + $0x16]]  ;;  %v94_v0 = vmax.f32 %v90_v56, 0.0  ;;  %v120_v1 = vmax.f32 %v116_v57, 0.0  ;;  %v111_v2 = vadd.f32 %v107_v58, %v101_v50 }
  0x2a   :  { %v125_v4 = vmul.f32 %v470_v39, %v93_v59  ;;  %v131_v5 = vmul.f32 %v475_v45, %v119_v60  ;;  %v151_v7 = vmul.f32 %v487_v53, %v93_v59  ;;  %v157_v8 = vmul.f32 %v489_v55, %v119_v60  ;;  %s343_s10 = sld [smem:[#allocation2 + $0x18]] }
  0x2b   :  { %v504_v11 = vstv %s477_s4  ;;  %v507_v12 = vstv %s482_s5  ;;  %s344_s11 = sld [smem:[#allocation2 + $0x1a]]  ;;  %v126_v14 = vmul.f32 %v470_v39, %v94_v0  ;;  %v132_v16 = vmul.f32 %v475_v45, %v120_v1 }
  0x2c   :  { %v135_v17 = vadd.f32 %v131_v5, %v125_v4  ;;  %v161_v18 = vadd.f32 %v157_v8, %v151_v7  ;;  %v511_v19 = vstv %s339_s6  ;;  %s513_s12 = sld [smem:[#allocation2 + $0x17]]  ;;  %v152_v20 = vmul.f32 %v487_v53, %v94_v0 }
  0x2d   :  { %v516_v22 = vstv %s340_s7  ;;  %s346_s13 = sld [smem:[#allocation2 + $0x19]]  ;;  %v136_v24 = vadd.f32 %v132_v16, %v126_v14  ;;  %v158_v25 = vmul.f32 %v489_v55, %v120_v1  ;;  %v95_v26 = vmax.f32 %v91_v62, 0.0 }
  0x2e   :  { %v141_v27 = vadd.f32 %v480_v47, %v135_v17  ;;  %v167_v28 = vadd.f32 %v494_v61, %v161_v18  ;;  %v521_v30 = vstv %s341_s8  ;;  %s347_s14 = sld [smem:[#allocation2 + $0x1b]]  ;;  %v117_v31 = vadd.f32 %v468_v37, %v111_v2 }
  0x2f   :  { %v524_v33 = vstv %s342_s9  ;;  %s348_s15 = sld [smem:[#allocation2 + $0x1c]]  ;;  %v142_v34 = vadd.f32 %v480_v47, %v136_v24  ;;  %v162_v35 = vadd.f32 %v158_v25, %v152_v20  ;;  %v127_v36 = vmul.f32 %v470_v39, %v95_v26 }
  0x30   :  { %v145_v38 = vmax.f32 %v141_v27, 0.0  ;;  %v171_v40 = vmax.f32 %v167_v28, 0.0  ;;  %v528_v41 = vstv %s343_s10  ;;  %s349_s16 = sld [smem:[#allocation2 + $0x1d]]  ;;  %v121_v42 = vmax.f32 %v117_v31, 0.0 }
  0x31   :  { %v530_v43 = vstv %s344_s11  ;;  %s350_s0 = sld [smem:[#allocation2 + $0x1e]]  ;;  %v146_v44 = vmax.f32 %v142_v34, 0.0  ;;  %v168_v46 = vadd.f32 %v494_v61, %v162_v35  ;;  %v153_v48 = vmul.f32 %v487_v53, %v95_v26 }
  0x32   :  { %v177_v49 = vmul.f32 %v497_v63, %v145_v38  ;;  %v183_v50 = vmul.f32 %v504_v11, %v171_v40  ;;  %v203_v51 = vmul.f32 %v511_v19, %v145_v38  ;;  %v209_v52 = vmul.f32 %v516_v22, %v171_v40 }
  0x33   :  { %v539_v54 = vstv %s513_s12  ;;  %v541_v56 = vstv %s346_s13  ;;  %v172_v57 = vmax.f32 %v168_v46, 0.0  ;;  %v178_v58 = vmul.f32 %v497_v63, %v146_v44 }
  0x34   :  { %v187_v59 = vadd.f32 %v183_v50, %v177_v49  ;;  %v213_v60 = vadd.f32 %v209_v52, %v203_v51  ;;  %v544_v62 = vstv %s347_s14  ;;  %v204_v0 = vmul.f32 %v511_v19, %v146_v44 }
  0x35   :  { %v547_v1 = vstv %s348_s15  ;;  %v184_v2 = vmul.f32 %v504_v11, %v172_v57  ;;  %v210_v4 = vmul.f32 %v516_v22, %v172_v57  ;;  %v133_v5 = vmul.f32 %v475_v45, %v121_v42 }
  0x36   :  { %v193_v7 = vadd.f32 %v507_v12, %v187_v59  ;;  %v219_v8 = vadd.f32 %v521_v30, %v213_v60  ;;  %v554_v14 = vstv %s349_s16  ;;  %v159_v16 = vmul.f32 %v489_v55, %v121_v42 }
  0x37   :  { %v557_v17 = vstv %s350_s0  ;;  %v188_v18 = vadd.f32 %v184_v2, %v178_v58  ;;  %v214_v20 = vadd.f32 %v210_v4, %v204_v0  ;;  %v137_v24 = vadd.f32 %v133_v5, %v127_v36 }
  0x38   :  { %v197_v25 = vmax.f32 %v193_v7, 0.0  ;;  %v223_v26 = vmax.f32 %v219_v8, 0.0  ;;  %v163_v27 = vadd.f32 %v159_v16, %v153_v48  ;;  %v50_v28 = vadd.f32 %v434_v6, %v439_v10 }
  0x39   :  { %v194_v31 = vadd.f32 %v507_v12, %v188_v18  ;;  %v220_v34 = vadd.f32 %v521_v30, %v214_v20  ;;  %v143_v35 = vadd.f32 %v480_v47, %v137_v24  ;;  %v60_v38 = vmul.f32 %v436_v9, %v432_v3 }
  0x3a   :  { %v229_v40 = vmul.f32 %v524_v33, %v197_v25  ;;  %v235_v42 = vmul.f32 %v528_v41, %v223_v26  ;;  %v255_v36 = vmul.f32 %v539_v54, %v197_v25  ;;  %v261_v44 = vmul.f32 %v541_v56, %v223_v26 }
  0x3b   :  { %v198_v46 = vmax.f32 %v194_v31, 0.0  ;;  %v224_v48 = vmax.f32 %v220_v34, 0.0  ;;  %v147_v6 = vmax.f32 %v143_v35, 0.0  ;;  %v169_v10 = vadd.f32 %v494_v61, %v163_v27 }
  0x3c   :  { %v239_v49 = vadd.f32 %v235_v42, %v229_v40  ;;  %v265_v50 = vadd.f32 %v261_v44, %v255_v36  ;;  %v54_v51 = vmax.f32 %v50_v28, 0.0  ;;  %v66_v52 = vadd.f32 %v443_v13, %v60_v38 }
  0x3d   :  { %v230_v3 = vmul.f32 %v524_v33, %v198_v46  ;;  %v236_v9 = vmul.f32 %v528_v41, %v224_v48  ;;  %v256_v57 = vmul.f32 %v539_v54, %v198_v46  ;;  %v262_v58 = vmul.f32 %v541_v56, %v224_v48 }
  0x3e   :  { %v245_v59 = vadd.f32 %v530_v43, %v239_v49  ;;  %v271_v60 = vadd.f32 %v544_v62, %v265_v50  ;;  %v173_v0 = vmax.f32 %v169_v10, 0.0  ;;  %v179_v2 = vmul.f32 %v497_v63, %v147_v6 }
  0x3f   :  { %v240_v4 = vadd.f32 %v236_v9, %v230_v3  ;;  %v266_v5 = vadd.f32 %v262_v58, %v256_v57  ;;  %v205_v7 = vmul.f32 %v511_v19, %v147_v6  ;;  %v70_v13 = vmax.f32 %v66_v52, 0.0 }
  0x40   :  { %v249_v8 = vmax.f32 %v245_v59, 0.0  ;;  %v275_v16 = vmax.f32 %v271_v60, 0.0  ;;  %v185_v18 = vmul.f32 %v504_v11, %v173_v0  ;;  %v211_v20 = vmul.f32 %v516_v22, %v173_v0 }
  0x41   :  { %v246_v24 = vadd.f32 %v530_v43, %v240_v4  ;;  %v272_v25 = vadd.f32 %v544_v62, %v266_v5  ;;  %v76_v26 = vmul.f32 %v446_v15, %v54_v51  ;;  %v82_v27 = vmul.f32 %v452_v21, %v70_v13 }
  0x42   :  { %v281_v28 = vmul.f32 %v547_v1, %v249_v8  ;;  %v287_v31 = vmul.f32 %v554_v14, %v275_v16  ;;  %v189_v34 = vadd.f32 %v185_v18, %v179_v2  ;;  %v215_v35 = vadd.f32 %v211_v20, %v205_v7 }
  0x43   :  { %v250_v38 = vmax.f32 %v246_v24, 0.0  ;;  %v276_v40 = vmax.f32 %v272_v25, 0.0  ;;  %v86_v42 = vadd.f32 %v82_v27, %v76_v26  ;;  %v102_v36 = vmul.f32 %v459_v29, %v54_v51 }
  0x44   :  { %v291_v44 = vadd.f32 %v287_v31, %v281_v28  ;;  %v195_v46 = vadd.f32 %v507_v12, %v189_v34  ;;  %v221_v48 = vadd.f32 %v521_v30, %v215_v35  ;;  %v108_v15 = vmul.f32 %v463_v32, %v70_v13 }
  0x45   :  { %v282_v21 = vmul.f32 %v547_v1, %v250_v38  ;;  %v288_v6 = vmul.f32 %v554_v14, %v276_v40  ;;  %v92_v10 = vadd.f32 %v454_v23, %v86_v42 }
  0x46   :  { %v297_v49 = vadd.f32 %v557_v17, %v291_v44  ;;  %v199_v50 = vmax.f32 %v195_v46, 0.0  ;;  %v225_v52 = vmax.f32 %v221_v48, 0.0  ;;  %v112_v3 = vadd.f32 %v108_v15, %v102_v36 }
  0x47   :  { %v292_v9 = vadd.f32 %v288_v6, %v282_v21  ;;  %v96_v29 = vmax.f32 %v92_v10, 0.0 }
  0x48   :  { %301 = vst [vmem:[#allocation7] sm:$0xff] %v297_v49  ;;  %v231_v51 = vmul.f32 %v524_v33, %v199_v50  ;;  %v237_v57 = vmul.f32 %v528_v41, %v225_v52  ;;  %v257_v32 = vmul.f32 %v539_v54, %v199_v50  ;;  %v263_v58 = vmul.f32 %v541_v56, %v225_v52 }
  0x49   :  { %v298_v59 = vadd.f32 %v557_v17, %v292_v9  ;;  %v118_v23 = vadd.f32 %v468_v37, %v112_v3  ;;  %v128_v4 = vmul.f32 %v470_v39, %v96_v29  ;;  %v154_v5 = vmul.f32 %v487_v53, %v96_v29 }
  0x4a   :  { %v241_v60 = vadd.f32 %v237_v57, %v231_v51  ;;  %v267_v0 = vadd.f32 %v263_v58, %v257_v32 }
  0x4b   :  { %302 = vst [vmem:[#allocation7 + $0x8] sm:$0xff] %v298_v59  ;;  %v122_v2 = vmax.f32 %v118_v23, 0.0 }
  0x4c   :  { %v247_v7 = vadd.f32 %v530_v43, %v241_v60  ;;  %v273_v13 = vadd.f32 %v544_v62, %v267_v0 }
  0x4d   :  { %v134_v8 = vmul.f32 %v475_v45, %v122_v2  ;;  %v160_v16 = vmul.f32 %v489_v55, %v122_v2 }
  0x4e   :  { %v251_v18 = vmax.f32 %v247_v7, 0.0  ;;  %v277_v20 = vmax.f32 %v273_v13, 0.0 }
  0x4f   :  { %v138_v24 = vadd.f32 %v134_v8, %v128_v4  ;;  %v164_v37 = vadd.f32 %v160_v16, %v154_v5 }
  0x50   :  { %v283_v25 = vmul.f32 %v547_v1, %v251_v18  ;;  %v289_v26 = vmul.f32 %v554_v14, %v277_v20 }
  0x51   :  { %v144_v39 = vadd.f32 %v480_v47, %v138_v24  ;;  %v170_v53 = vadd.f32 %v494_v61, %v164_v37 }
  0x52   :  { %v293_v27 = vadd.f32 %v289_v26, %v283_v25 }
  0x53   :  { %v148_v28 = vmax.f32 %v144_v39, 0.0  ;;  %v174_v31 = vmax.f32 %v170_v53, 0.0 }
  0x54   :  { %v299_v34 = vadd.f32 %v557_v17, %v293_v27 }
  0x55   :  { %v180_v45 = vmul.f32 %v497_v63, %v148_v28  ;;  %v186_v55 = vmul.f32 %v504_v11, %v174_v31  ;;  %v206_v35 = vmul.f32 %v511_v19, %v148_v28  ;;  %v212_v38 = vmul.f32 %v516_v22, %v174_v31 }
  0x56   :  { %303 = vst [vmem:[#allocation7 + $0x10] sm:$0xff] %v299_v34 }
  0x57   :  { %v190_v40 = vadd.f32 %v186_v55, %v180_v45  ;;  %v216_v42 = vadd.f32 %v212_v38, %v206_v35 }
  0x59   :  { %v196_v47 = vadd.f32 %v507_v12, %v190_v40  ;;  %v222_v61 = vadd.f32 %v521_v30, %v216_v42 }
  0x5b   :  { %v200_v36 = vmax.f32 %v196_v47, 0.0  ;;  %v226_v44 = vmax.f32 %v222_v61, 0.0 }
  0x5d   :  { %v232_v46 = vmul.f32 %v524_v33, %v200_v36  ;;  %v238_v48 = vmul.f32 %v528_v41, %v226_v44  ;;  %v258_v63 = vmul.f32 %v539_v54, %v200_v36  ;;  %v264_v11 = vmul.f32 %v541_v56, %v226_v44 }
  0x5f   :  { %v242_v19 = vadd.f32 %v238_v48, %v232_v46  ;;  %v268_v15 = vadd.f32 %v264_v11, %v258_v63 }
  0x61   :  { %v248_v22 = vadd.f32 %v530_v43, %v242_v19  ;;  %v274_v21 = vadd.f32 %v544_v62, %v268_v15 }
  0x63   :  { %v252_v6 = vmax.f32 %v248_v22, 0.0  ;;  %v278_v12 = vmax.f32 %v274_v21, 0.0 }
  0x65   :  { %v284_v30 = vmul.f32 %v547_v1, %v252_v6  ;;  %v290_v10 = vmul.f32 %v554_v14, %v278_v12 }
  0x67   :  { %v294_v33 = vadd.f32 %v290_v10, %v284_v30 }
  0x69   :  { %v300_v41 = vadd.f32 %v557_v17, %v294_v33 }
  0x6b   :  { %304 = vst [vmem:[#allocation7 + $0x18] sm:$0xff] %v300_v41 }
  0x6c   :  { %393 = shalt.err (!%p390_p9)
}
  0x6d   :  { %314 = dma.vmem_to_hbm [thread:$0]  %s312_s18, 512, %s633_s2, [#allocation4]  }
  0x6e   :  { %406 = dma.done.wait [#allocation4], 512  }
  0x6f   :  { %407 = vsyncadd [#allocation4], 4294966784 }
  0x70   :  { %318 = vsyncpa [#allocation3], 1 }
  0x71   :  { %319 = vsyncpa [#allocation4], 1 }
  0x72   :  { %320 = vsyncpa [#allocation5], 1 }

</bundles_post_ra>
